<compile_context>
chip_gen: v5e
topology: v5e:2x2
jax: 0.10.0
libtpu: 0.0.40
codegen_flags: <defaults>
</compile_context>

<pallas_src>
import functools

import jax
import jax.numpy as jnp
from jax.experimental import pallas as pl
from jax.experimental.pallas import tpu as pltpu


def _round_up(x, m):
    return ((x + m - 1) // m) * m


def time2vec_kernel(t_ref, wb_ref, o_ref):
    # t_ref: (TILE_N, 1), wb_ref: (2, D) [row 0 = W, row 1 = b], o_ref: (TILE_N, D)
    w = wb_ref[0:1, :]                               # (1, D)
    b = wb_ref[1:2, :]                               # (1, D)
    x = t_ref[...] * w + b                           # (TILE_N, D) f32 VPU broadcast
    o_ref[...] = jnp.sin(x).astype(o_ref.dtype)      # sin everywhere

    # Only grid block 0 contains global batch row 0, which stays linear
    # (torch.cat((x[:1], sin(x[1:])))).  Recompute just that row — do NOT
    # reference the full-tile `x` here (keeps the big intermediate dead).
    @pl.when(pl.program_id(0) == 0)
    def _():
        o_ref[0:1, :] = (t_ref[0:1, :] * w + b).astype(o_ref.dtype)


def time2vec(t, weight, bias, *, tile_n=2048, out_dtype=jnp.float32):
    """Time2Vec forward pass.

    t:      (N, 1) float32 times
    weight: (time_dim, 1) float32   (torch nn.Linear(1, time_dim) layout)
    bias:   (time_dim,)   float32
    returns (N, time_dim) out_dtype
    """
    N = t.shape[0]
    D = weight.shape[0]

    # Lane-dense output: pad the feature axis to a multiple of 128.
    d_pad = _round_up(D, 128)

    # Row tile: multiple of 8 (sublane).  Cap at round_up(ceil(N/2), 8) so the
    # grid has >= 2 blocks (keeps both v7x TensorCores busy for mid-size N).
    tile_n = max(8, min(_round_up(tile_n, 8), _round_up(pl.cdiv(N, 2), 8)))
    grid = (pl.cdiv(N, tile_n),)    # ragged last block; OOB output rows masked

    t_f32 = t.astype(jnp.float32)
    # Fused resident parameter slab: row 0 = W, row 1 = b, padded to d_pad.
    wb = jnp.zeros((2, d_pad), jnp.float32)
    wb = wb.at[0, :D].set(weight.reshape(D).astype(jnp.float32))
    wb = wb.at[1, :D].set(bias.reshape(D).astype(jnp.float32))

    out_isz = jnp.dtype(out_dtype).itemsize
    # VMEM budget (per-buffer), double-buffered by the pipeliner:
    #   output tile + lane-padded (TILE_N, 128) t tile + resident params.
    per_step = tile_n * d_pad * out_isz + tile_n * 128 * 4 + 2 * d_pad * 4
    vmem_limit = int(2 * per_step * 1.25) + (2 << 20)
    vmem_limit = min(max(vmem_limit, 16 << 20), 48 << 20)   # 48 MiB cap (v7x = 64 MiB phys)

    out = pl.pallas_call(
        time2vec_kernel,
        out_shape=jax.ShapeDtypeStruct((N, d_pad), out_dtype),
        grid=grid,
        in_specs=[
            pl.BlockSpec((tile_n, 1), lambda i: (i, 0)),    # per-block time rows
            pl.BlockSpec((2, d_pad), lambda i: (0, 0)),     # fused W/b, resident
        ],
        out_specs=pl.BlockSpec((tile_n, d_pad), lambda i: (i, 0)),
        compiler_params=pltpu.CompilerParams(
            dimension_semantics=("parallel",),
            vmem_limit_bytes=vmem_limit,
        ),
        cost_estimate=pl.CostEstimate(
            flops=2 * N * d_pad,
            transcendentals=N * d_pad,
            bytes_accessed=N * d_pad * out_isz + 4 * N + 8 * d_pad,
        ),
    )(t_f32, wb)

    # Feature padding (if any) is sliced off; production D=768 returns as-is.
    if d_pad != D:
        out = out[:, :D]
    return out


def _reference(t, weight, bias):
    x = t @ weight.T + bias
    return jnp.concatenate([x[:1], jnp.sin(x[1:])], axis=0)


if __name__ == "__main__":
    key = jax.random.PRNGKey(0)
    k_t, k_w, k_b = jax.random.split(key, 3)

    # Small test at the production feature width (768, lane-dense, no post-slice).
    N = 16
    time_dim = 768

    # nn.Linear(1, time_dim) shapes; fan_in = 1 -> init bound 1.0.
    weight = jax.random.uniform(k_w, (time_dim, 1), jnp.float32, -1.0, 1.0)
    bias = jax.random.uniform(k_b, (time_dim,), jnp.float32, -1.0, 1.0)
    t = jax.random.uniform(k_t, (N, 1), jnp.float32, 0.0, 10.0)

    ref = _reference(t, weight, bias)

    # f32 output path.
    out = jax.block_until_ready(time2vec(t, weight, bias))
    assert out.shape == (N, time_dim)
    assert jnp.allclose(out, ref, atol=1e-5), "mismatch vs reference (D=768, f32)"

    # bf16 output path (halves HBM writeback) — looser tolerance vs f32 reference.
    out_bf16 = jax.block_until_ready(
        time2vec(t, weight, bias, out_dtype=jnp.bfloat16))
    assert out_bf16.dtype == jnp.bfloat16
    assert jnp.allclose(out_bf16.astype(jnp.float32), ref, atol=5e-2), \
        "mismatch vs reference (D=768, bf16)"

    # Padding / ragged path: N not a multiple of the tile, D not a multiple of 128.
    k2_t, k2_w, k2_b = jax.random.split(jax.random.PRNGKey(1), 3)
    N2, D2 = 10, 32
    w2 = jax.random.uniform(k2_w, (D2, 1), jnp.float32, -1.0, 1.0)
    b2 = jax.random.uniform(k2_b, (D2,), jnp.float32, -1.0, 1.0)
    t2 = jax.random.uniform(k2_t, (N2, 1), jnp.float32, 0.0, 10.0)

    out2 = jax.block_until_ready(time2vec(t2, w2, b2))
    ref2 = _reference(t2, w2, b2)
    assert out2.shape == (N2, D2)
    assert jnp.allclose(out2, ref2, atol=1e-5), "mismatch vs reference (ragged/padded)"

    print("KERNEL_OK")
</pallas_src>

<mosaic_0001>
module attributes {stable_mosaic.version = 11 : i64} {
  func.func @time2vec_kernel(%arg0: i32, %arg1: memref<8x1xf32, #tpu.memory_space<vmem>>, %arg2: memref<2x768xf32, #tpu.memory_space<vmem>>, %arg3: memref<8x768xf32, #tpu.memory_space<vmem>>) attributes {dimension_semantics = [#tpu.dimension_semantics<parallel>], iteration_bounds = array<i64: 2>, scalar_prefetch = 0 : i64, scratch_operands = 0 : i64, tpu.core_type = #tpu.core_type<tc>, window_params = [{transform_indices = @transform_0, window_bounds = array<i64: 8, 1>}, {pipeline_mode = #tpu.pipeline_mode<synchronous>, transform_indices = @transform_1, window_bounds = array<i64: 2, 768>}, {transform_indices = @transform_2, window_bounds = array<i64: 8, 768>}]} {
    %c0 = arith.constant 0 : index
    %c0_0 = arith.constant 0 : index
    %0 = vector.load %arg2[%c0, %c0_0] : memref<2x768xf32, #tpu.memory_space<vmem>>, vector<1x768xf32>
    %c1 = arith.constant 1 : index
    %c0_1 = arith.constant 0 : index
    %1 = vector.load %arg2[%c1, %c0_1] : memref<2x768xf32, #tpu.memory_space<vmem>>, vector<1x768xf32>
    %c0_2 = arith.constant 0 : index
    %c0_3 = arith.constant 0 : index
    %2 = vector.load %arg1[%c0_2, %c0_3] : memref<8x1xf32, #tpu.memory_space<vmem>>, vector<8x1xf32>
    %3 = vector.broadcast %2 : vector<8x1xf32> to vector<8x768xf32>
    %4 = vector.broadcast %0 : vector<1x768xf32> to vector<8x768xf32>
    %5 = arith.mulf %3, %4 : vector<8x768xf32>
    %6 = vector.broadcast %1 : vector<1x768xf32> to vector<8x768xf32>
    %7 = arith.addf %5, %6 : vector<8x768xf32>
    %8 = math.sin %7 : vector<8x768xf32>
    %c0_4 = arith.constant 0 : index
    %c0_5 = arith.constant 0 : index
    %9 = vector.load %arg3[%c0_4, %c0_5] : memref<8x768xf32, #tpu.memory_space<vmem>>, vector<8x768xf32>
    tpu.vector_store %arg3[%c0_4, %c0_5], %8 {strides = array<i32>} : memref<8x768xf32, #tpu.memory_space<vmem>>, vector<8x768xf32>,
    %c0_i32 = arith.constant 0 : i32
    %10 = arith.cmpi eq, %arg0, %c0_i32 : i32
    %11 = arith.extui %10 : i1 to i32
    %c0_i32_6 = arith.constant 0 : i32
    %12 = arith.cmpi ne, %11, %c0_i32_6 : i32
    scf.if %12 {
      %c0_7 = arith.constant 0 : index
      %c0_8 = arith.constant 0 : index
      %13 = vector.load %arg1[%c0_7, %c0_8] : memref<8x1xf32, #tpu.memory_space<vmem>>, vector<1x1xf32>
      %14 = vector.broadcast %13 : vector<1x1xf32> to vector<1x768xf32>
      %15 = arith.mulf %14, %0 : vector<1x768xf32>
      %16 = arith.addf %15, %1 : vector<1x768xf32>
      %c0_9 = arith.constant 0 : index
      %c0_10 = arith.constant 0 : index
      %17 = vector.load %arg3[%c0_9, %c0_10] : memref<8x768xf32, #tpu.memory_space<vmem>>, vector<1x768xf32>
      tpu.vector_store %arg3[%c0_9, %c0_10], %16 {strides = array<i32>} : memref<8x768xf32, #tpu.memory_space<vmem>>, vector<1x768xf32>,
    } else {
    }
    return
  }
  func.func @transform_0(%arg0: i32) -> (i32, i32) {
    %c0_i32 = arith.constant 0 : i32
    %c0_i32_0 = arith.constant 0 : i32
    return %arg0, %c0_i32 : i32, i32
  }
  func.func @transform_1(%arg0: i32) -> (i32, i32) {
    %c0_i32 = arith.constant 0 : i32
    %c0_i32_0 = arith.constant 0 : i32
    %c0_i32_1 = arith.constant 0 : i32
    return %c0_i32, %c0_i32_0 : i32, i32
  }
  func.func @transform_2(%arg0: i32) -> (i32, i32) {
    %c0_i32 = arith.constant 0 : i32
    %c0_i32_0 = arith.constant 0 : i32
    return %arg0, %c0_i32 : i32, i32
  }
}

</mosaic_0001>

<bundles_post_ra>
// kernel: tpu_custom_call.1
= control target key start
LH: loop header
LB: loop body
LE: loop exit
PB: predicated region body
PF: predicated region fallthrough
CT: control target
= control target key end

     0   :  { %7 = vsyncpa [#allocation3], 0  ;;  %s2203_s0 = inlined_call_operand.vmem [shape: f32[16,1], index: 0, kind: input, shape index: {}]   ;;  %s2204_s1 = inlined_call_operand.vmem [shape: f32[2,768], index: 1, kind: input, shape index: {}]   ;;  %s2205_s2 = inlined_call_operand.hbm [shape: f32[16,768], index: 2, kind: output, shape index: {}]  }
   0x1   :  { %9 = vsyncpa [#allocation3 + $0x1], 0  ;;  %s1414_s9 = smov 0   ;;  %s1416_s10 = smov 0  }
   0x2   :  { %s1418_s11 = smov 0   ;;  %s1420_s12 = smov 0  }
   0x3 LB: > { %s1435_s13 = sadd.s32 4294967295, %s1389_s12   ;;  %s1248_s14 = sadd.s32 4294967294, %s1389_s12   ;;  %s1389_s12 = sphi %s1420_s12, %s2229_s12   ;;  %s1385_s11 = sphi %s1418_s11, %s2228_s11   ;;  %s1381_s10 = sphi %s1416_s10, %s2227_s10   ;;  %s1377_s9 = sphi %s1414_s9, %s2226_s9  }
   0x4   : > { %s1439_s15 = sadd.s32 1, %s1389_s12   ;;  %s69_s16 = sadd.s32 1, %s1385_s11 }
   0x5   : > { %s66_s17 = ssub.s32 %s1389_s12, %s1439_s15  ;;  %p79_p0 = scmp.ne.s32.totalorder %s1385_s11, %s1381_s10 }
   0x6   : > { %p67_p1 = scmp.eq.s32.totalorder %s66_s17, 0  ;;  %p80_p2 = scmp.eq.s32.totalorder %s1435_s13, 1 }
   0x7   : > { %p85_p3 = scmp.ne.s32.totalorder %s1381_s10, %s1377_s9  ;;  %p86_p4 = scmp.eq.s32.totalorder %s1248_s14, 1 }
   0x8   : > { %s1450_s18 = scalar_select %p67_p1, %s1385_s11, %s69_s16  }
   0x9   : > { %p1452_p5 = por %p80_p2, %p79_p0  ;;  %p1456_p6 = por %p86_p4, %p85_p3 }
   0xa   : > { %p1251_p7 = scmp.ge.s32.totalorder %s1389_s12, 1  ;;  %p114_p8 = scmp.lt.s32.totalorder %s1389_s12, 3 }
   0xc   : > { %p115_p9 = pnand %p1251_p7, %p114_p8 }
   0xd   : > { %p135_p10 = scmp.lt.s32.totalorder (!%p115_p9), %s1435_s13, 1  ;;  %s132_s30 = sand.u32 (!%p115_p9), 1, %s1381_s10  }
   0xe   : > { %118 = sbr.rel (%p115_p9) target bundleno = 556 (0x22c), region = 28  ;;  %p1272_p11 = scmp.ne.s32.totalorder (!%p115_p9), %s1435_s13, 0 }
   0xf   : > { %s1807_s3 = smul.u32 (!%p115_p9), 48, %s132_s30 }
  0x11   : > { %s1829_s4 = scalar_lea.vmem (!%p115_p9), [#allocation2], %s1807_s3 }
  0x13   : > { %v1391_v0 = vmov 0   ;;  %s136_s21 = scalar_select %p135_p10, %s1435_s13, 1  ;;  %v1474_v2 = vld [vmem:[%s2204_s1] ss:$2 sm:$0x3f] }
  0x14   : > { %1325 = vset.pattern.permute.xlu0 %v1391_v0  ;;  %v1479_v3 = vld [vmem:[%s2204_s1 + $0x1] ss:$2 sm:$0x3f]  ;;  %v149_v4 = vperm.slane %v1474_v2, 0  ;;  %v150_v5 = vperm.slane %v1474_v2, 1  ;;  %v151_v6 = vperm.slane %v1474_v2, 2 }
  0x15   : > { %s1252_s22 = sshll.u32 %s136_s21, 3  ;;  %v152_v7 = vperm.slane %v1474_v2, 3  ;;  %v153_v8 = vperm.slane %v1474_v2, 4  ;;  %v154_v9 = vperm.slane %v1474_v2, 5  ;;  %v2206_v10 = vperm.slane %v1479_v3, 0 }
  0x16   : > { %s1468_s25 = scalar_lea.vmem %s2203_s0, %s1252_s22  ;;  %v169_v11 = vperm.slane %v1479_v3, 1  ;;  %v2209_v12 = vperm.slane %v1479_v3, 3  ;;  %v2210_v14 = vperm.slane %v1479_v3, 2  ;;  %v2208_v15 = vperm.slane %v1479_v3, 4 }
  0x17   : > { %v142_v1 = vld [vmem:[%s1468_s25] sm:$0xff]  ;;  %v2207_v16 = vperm.slane %v1479_v3, 5  ;;  %v1392_v56 = vmov 683565275   ;;  %v1393_v58 = vmov 2475754826  }
  0x18   : > { %145 = vperm.xlu0 %1325, %v142_v1   ;;  %v1394_v62 = vmov 2131351028  }
  0x8a   : > { %v146_v13 = vpop.permute.xlu0 %145 }
  0x8b   : > { %v161_v17 = vmul.f32 %v149_v4, %v146_v13  ;;  %v162_v18 = vmul.f32 %v150_v5, %v146_v13  ;;  %v163_v19 = vmul.f32 %v151_v6, %v146_v13  ;;  %v164_v20 = vmul.f32 %v152_v7, %v146_v13 }
  0x8c   : > { %v165_v21 = vmul.f32 %v153_v8, %v146_v13  ;;  %v166_v22 = vmul.f32 %v154_v9, %v146_v13  ;;  %v1395_v13 = vmov 2102212464  }
  0x8d   : > { %v1507_v23 = vadd.f32 %v2206_v10, %v161_v17  ;;  %v1511_v24 = vadd.f32 %v169_v11, %v162_v18  ;;  %v1515_v25 = vadd.f32 %v2209_v12, %v164_v20  ;;  %v1519_v26 = vadd.f32 %v2210_v14, %v163_v19 }
  0x8e   : > { %v1523_v27 = vadd.f32 %v2208_v15, %v165_v21  ;;  %v1527_v28 = vadd.f32 %v2207_v16, %v166_v22  ;;  %v1396_v19 = vmov 920167782   ;;  %v1397_v22 = vmov 1326507024  }
  0x8f   : > { %v186_v29 = vand.u32 2147483647, %v1507_v23  ;;  %v189_v30 = vand.u32 2139095040, %v1507_v23  ;;  %v341_v31 = vand.u32 2147483647, %v1511_v24  ;;  %v344_v32 = vand.u32 2139095040, %v1511_v24 }
  0x90   : > { %v499_v37 = vand.u32 2139095040, %v1519_v26 }
  0x91   : > { %v190_v33 = vshrl.u32 %v189_v30, 23  ;;  %v193_v34 = vand.u32 8388607, %v186_v29  ;;  %v345_v35 = vshrl.u32 %v344_v32, 23  ;;  %v348_v36 = vand.u32 8388607, %v341_v31 }
  0x92   : > { %v500_v44 = vshrl.u32 %v499_v37, 23 }
  0x93   : > { %v1254_v38 = vadd.s32 4294967169, %v190_v33  ;;  %v194_v39 = vor.u32 8388608, %v193_v34  ;;  %v1257_v40 = vadd.s32 4294967169, %v345_v35  ;;  %v349_v41 = vor.u32 8388608, %v348_v36 }
  0x94   : > { %v1542_v50 = vadd.s32 4294967169, %v500_v44 }
  0x95   : > { %v196_v42 = vadd.s32 1, %v1254_v38  ;;  %v351_v43 = vadd.s32 1, %v1257_v40  ;;  %v1538_v45 = vshll.u32 %v194_v39, 8  ;;  %v1540_v47 = vshll.u32 %v349_v41, 8 }
  0x97   : > { %vm197_vm0 = vcmp.gt.s32.totalorder %v196_v42, 0  ;;  %vm352_vm1 = vcmp.gt.s32.totalorder %v351_v43, 0  ;;  %v1545_v52 = vand.u32 65535, %v1538_v45  ;;  %v1548_v53 = vshrl.u32 %v1538_v45, 16 }
  0x98   : > { %v198_v46 = vsel %vm197_vm0, %v196_v42, 0  ;;  %v353_v49 = vsel %vm352_vm1, %v351_v43, 0  ;;  %v1557_v60 = vand.u32 65535, %v1540_v47 }
  0x99   : > { %v200_v48 = vand.u32 31, %v198_v46  ;;  %v1550_v54 = vand.u32 31, %v353_v49  ;;  %v1552_v55 = vshrl.u32 %v198_v46, 5 }
  0x9b   : > { %v201_v51 = vsub.s32 32, %v200_v48  ;;  %v203_v57 = vshll.u32 %v1392_v56, %v200_v48  ;;  %v206_v59 = vshll.u32 %v1393_v58, %v200_v48  ;;  %v209_v1 = vshll.u32 %v1394_v62, %v200_v48 }
  0x9c   : > { %v212_v18 = vshll.u32 %v1395_v13, %v200_v48  ;;  %v215_v21 = vshll.u32 %v1396_v19, %v200_v48  ;;  %v1568_v35 = vsub.s32 32, %v1550_v54  ;;  %vm218_vm2 = vcmp.lt.s32.totalorder %v1552_v55, 1 }
  0x9d   : > { %v204_v61 = vshrl.u32 %v1393_v58, %v201_v51  ;;  %v207_v63 = vshrl.u32 %v1394_v62, %v201_v51  ;;  %v210_v17 = vshrl.u32 %v1395_v13, %v201_v51  ;;  %v213_v20 = vshrl.u32 %v1396_v19, %v201_v51 }
  0x9e   : > { %v216_v30 = vshrl.u32 %v1397_v22, %v201_v51  ;;  %vm219_vm3 = vcmp.lt.s32.totalorder %v1552_v55, 2  ;;  %v202_v38 = vshrl.u32 %v1392_v56, %v201_v51  ;;  %vm221_vm4 = vcmp.lt.s32.totalorder %v1552_v55, 4 }
  0x9f   : > { %v205_v32 = vor.u32 %v204_v61, %v203_v57  ;;  %v208_v33 = vor.u32 %v207_v63, %v206_v59  ;;  %v211_v34 = vor.u32 %v210_v17, %v209_v1  ;;  %v214_v36 = vor.u32 %v213_v20, %v212_v18 }
  0xa0   : > { %v217_v37 = vor.u32 %v216_v30, %v215_v21  ;;  %vm220_vm5 = vcmp.lt.s32.totalorder %v1552_v55, 3  ;;  %v358_v43 = vshll.u32 %v1392_v56, %v1550_v54  ;;  %v359_v51 = vshrl.u32 %v1393_v58, %v1568_v35 }
  0xa1   : > { %v226_v39 = vsel %vm218_vm2, %v205_v32, %v208_v33  ;;  %v230_v40 = vsel %vm218_vm2, %v208_v33, %v211_v34  ;;  %v227_v41 = vsel %vm221_vm4, %v214_v36, 920167782  ;;  %v223_v44 = vsel %vm221_vm4, %v211_v34, 2102212464 }
  0xa2   : > { %v231_v42 = vsel %vm221_vm4, %v217_v37, 1326507024  ;;  %v228_v46 = vsel %vm220_vm5, %v211_v34, %v227_v41  ;;  %v361_v61 = vshll.u32 %v1393_v58, %v1550_v54  ;;  %v362_v63 = vshrl.u32 %v1394_v62, %v1568_v35 }
  0xa3   : > { %v232_v48 = vsel %vm220_vm5, %v214_v36, %v231_v42  ;;  %v229_v57 = vsel %vm219_vm3, %v226_v39, %v228_v46  ;;  %v222_v21 = vsel %vm218_vm2, %v202_v38, %v205_v32  ;;  %v224_v30 = vsel %vm220_vm5, %v208_v33, %v223_v44 }
  0xa4   : > { %v233_v59 = vsel %vm219_vm3, %v230_v40, %v232_v48  ;;  %v259_v18 = vand.u32 65535, %v229_v57  ;;  %v260_v20 = vshrl.u32 %v229_v57, 16  ;;  %v1599_v34 = vshrl.u32 %v353_v49, 5 }
  0xa5   : > { %v237_v1 = vand.u32 65535, %v233_v59  ;;  %v238_v17 = vshrl.u32 %v233_v59, 16  ;;  %v1601_v36 = vor.u32 %v359_v51, %v358_v43  ;;  %v1605_v40 = vor.u32 %v362_v63, %v361_v61 }
  0xa6   : > { %v365_v41 = vshrl.u32 %v1395_v13, %v1568_v35  ;;  %v262_v32 = vmul.u32 %v260_v20, %v1545_v52  ;;  %v263_v38 = vmul.u32 %v259_v18, %v1548_v53  ;;  %v364_v49 = vshll.u32 %v1394_v62, %v1550_v54 }
  0xa7   : > { %v240_v37 = vmul.u32 %v238_v17, %v1545_v52  ;;  %v241_v39 = vmul.u32 %v237_v1, %v1548_v53  ;;  %v239_v42 = vmul.u32 %v237_v1, %v1545_v52  ;;  %v242_v33 = vmul.u32 %v238_v17, %v1548_v53 }
  0xa8   : > { %v261_v44 = vmul.u32 %v259_v18, %v1545_v52  ;;  %v264_v46 = vmul.u32 %v260_v20, %v1548_v53  ;;  %v265_v59 = vshll.u32 %v262_v32, 16  ;;  %v267_v63 = vshll.u32 %v263_v38, 16 }
  0xa9   : > { %v243_v43 = vshll.u32 %v240_v37, 16  ;;  %v244_v48 = vshrl.u32 %v240_v37, 16  ;;  %v245_v51 = vshll.u32 %v241_v39, 16  ;;  %v246_v57 = vshrl.u32 %v241_v39, 16 }
  0xaa   : > { %v366_v1 = vor.u32 %v365_v41, %v364_v49  ;;  %vm269_vm7 = vc.u32 %v261_v44, %v265_v59  ;;  %v271_v16 = vadd.s32 %v265_v59, %v261_v44  ;;  %v368_v17 = vshrl.u32 %v1396_v19, %v1568_v35 }
  0xab   : > { %vm247_vm6 = vc.u32 %v239_v42, %v243_v43  ;;  %v249_v61 = vadd.s32 %v243_v43, %v239_v42  ;;  %v270_v52 = vsel %vm269_vm7, 1, %v1391_v0  ;;  %v367_v53 = vshll.u32 %v1395_v13, %v1550_v54 }
  0xac   : > { %v248_v10 = vsel %vm247_vm6, 1, %v1391_v0  ;;  %v272_v20 = vadd.s32 %v270_v52, %v264_v46  ;;  %vm273_vm9 = vc.u32 %v271_v16, %v267_v63  ;;  %v370_v37 = vshll.u32 %v1396_v19, %v1550_v54 }
  0xad   : > { %v250_v15 = vadd.s32 %v248_v10, %v242_v33  ;;  %vm251_vm8 = vc.u32 %v249_v61, %v245_v51  ;;  %v274_v41 = vsel %vm273_vm9, 1, %v1391_v0  ;;  %v369_v42 = vor.u32 %v368_v17, %v367_v53 }
  0xae   : > { %v252_v18 = vsel %vm251_vm8, 1, %v1391_v0  ;;  %v371_v10 = vshrl.u32 %v1397_v22, %v1568_v35  ;;  %v266_v49 = vshrl.u32 %v262_v32, 16  ;;  %v268_v33 = vshrl.u32 %v263_v38, 16 }
  0xaf   : > { %v254_v39 = vadd.s32 %v252_v18, %v250_v15  ;;  %v1629_v43 = vadd.s32 %v271_v16, %v267_v63  ;;  %v276_v44 = vadd.s32 %v274_v41, %v272_v20  ;;  %vm373_vm10 = vcmp.lt.s32.totalorder %v1599_v34, 1 }
  0xb0   : > { %v372_v59 = vor.u32 %v371_v10, %v370_v37  ;;  %vm376_vm11 = vcmp.lt.s32.totalorder %v1599_v34, 4  ;;  %vm375_vm12 = vcmp.lt.s32.totalorder %v1599_v34, 3  ;;  %v381_v15 = vsel %vm373_vm10, %v1601_v36, %v1605_v40 }
  0xb1   : > { %v255_v51 = vadd.s32 %v254_v39, %v244_v48  ;;  %v277_v46 = vadd.s32 %v276_v44, %v266_v49  ;;  %v382_v54 = vsel %vm376_vm11, %v369_v42, 920167782  ;;  %vm374_vm13 = vcmp.lt.s32.totalorder %v1599_v34, 2 }
  0xb2   : > { %v383_v32 = vsel %vm375_vm12, %v366_v1, %v382_v54  ;;  %v385_v38 = vsel %vm373_vm10, %v1605_v40, %v366_v1  ;;  %v225_v48 = vsel %vm219_vm3, %v222_v21, %v224_v30  ;;  %v391_v52 = vshrl.u32 %v1540_v47, 16 }
  0xb3   : > { %v1640_v16 = vadd.s32 %v255_v51, %v246_v57  ;;  %v278_v61 = vadd.s32 %v277_v46, %v268_v33  ;;  %v384_v63 = vsel %vm374_vm13, %v381_v15, %v383_v32  ;;  %v386_v57 = vsel %vm376_vm11, %v372_v59, 1326507024 }
  0xb4   : > { %v387_v17 = vsel %vm375_vm12, %v369_v42, %v386_v57  ;;  %v414_v53 = vand.u32 65535, %v384_v63  ;;  %v415_v21 = vshrl.u32 %v384_v63, 16  ;;  %v506_v30 = vadd.s32 1, %v1542_v50 }
  0xb5   : > { %vm281_vm14 = vc.u32 %v1640_v16, %v1629_v43  ;;  %v282_v18 = vadd.s32 1, %v278_v61  ;;  %v388_v55 = vsel %vm374_vm13, %v385_v38, %v387_v17  ;;  %v279_v20 = vmul.u32 %v1538_v45, %v225_v48 }
  0xb6   : > { %v392_v37 = vand.u32 65535, %v388_v55  ;;  %v393_v39 = vshrl.u32 %v388_v55, 16  ;;  %v496_v41 = vand.u32 2147483647, %v1519_v26  ;;  %v357_v42 = vshrl.u32 %v1392_v56, %v1568_v35 }
  0xb7   : > { %v283_v10 = vsel %vm281_vm14, %v282_v18, %v278_v61  ;;  %v417_v49 = vmul.u32 %v415_v21, %v1557_v60  ;;  %v418_v33 = vmul.u32 %v414_v53, %v391_v52  ;;  %v378_v51 = vsel %vm376_vm11, %v366_v1, 2102212464 }
  0xb8   : > { %v284_v44 = vadd.s32 %v283_v10, %v279_v20  ;;  %v395_v59 = vmul.u32 %v393_v39, %v1557_v60  ;;  %v396_v50 = vmul.u32 %v392_v37, %v391_v52  ;;  %v416_v45 = vmul.u32 %v414_v53, %v1557_v60 }
  0xb9   : > { %v419_v46 = vmul.u32 %v415_v21, %v391_v52  ;;  %v420_v15 = vshll.u32 %v417_v49, 16  ;;  %vm507_vm15 = vcmp.gt.s32.totalorder %v506_v30, 0  ;;  %v394_v32 = vmul.u32 %v392_v37, %v1557_v60 }
  0xba   : > { %v285_v54 = vadd.s32 536870912, %v284_v44  ;;  %v397_v38 = vmul.u32 %v393_v39, %v391_v52  ;;  %v398_v35 = vshll.u32 %v395_v59, 16  ;;  %v400_v48 = vshll.u32 %v396_v50, 16 }
  0xbb   : > { %v422_v61 = vshll.u32 %v418_v33, 16  ;;  %vm424_vm0 = vc.u32 %v416_v45, %v420_v15  ;;  %v426_v63 = vadd.s32 %v420_v15, %v416_v45  ;;  %v503_v55 = vand.u32 8388607, %v496_v41 }
  0xbc   : > { %v286_v57 = vshrl.u32 %v285_v54, 30  ;;  %vm402_vm1 = vc.u32 %v394_v32, %v398_v35  ;;  %v404_v1 = vadd.s32 %v398_v35, %v394_v32  ;;  %v425_v17 = vsel %vm424_vm0, 1, %v1391_v0 }
  0xbd   : > { %v403_v18 = vsel %vm402_vm1, 1, %v1391_v0  ;;  %v427_v53 = vadd.s32 %v425_v17, %v419_v46  ;;  %vm428_vm2 = vc.u32 %v426_v63, %v422_v61  ;;  %v377_v60 = vsel %vm373_vm10, %v357_v42, %v1601_v36 }
  0xbe   : > { %v287_v21 = vshll.u32 %v286_v57, 30  ;;  %v405_v52 = vadd.s32 %v403_v18, %v397_v38  ;;  %vm406_vm3 = vc.u32 %v404_v1, %v400_v48  ;;  %v379_v20 = vsel %vm375_vm12, %v1605_v40, %v378_v51 }
  0xbf   : > { %v407_v37 = vsel %vm406_vm3, 1, %v1391_v0  ;;  %v429_v39 = vsel %vm428_vm2, 1, %v1391_v0  ;;  %v508_v10 = vsel %vm507_vm15, %v506_v30, 0  ;;  %v399_v46 = vshrl.u32 %v395_v59, 16 }
  0xc0   : > { %v288_v45 = vsub.s32 %v284_v44, %v287_v21  ;;  %v409_v15 = vadd.s32 %v407_v37, %v405_v52  ;;  %v431_v54 = vadd.s32 %v429_v39, %v427_v53  ;;  %v401_v32 = vshrl.u32 %v396_v50, 16 }
  0xc1   : > { %v421_v35 = vshrl.u32 %v417_v49, 16  ;;  %v504_v17 = vor.u32 8388608, %v503_v55  ;;  %v510_v36 = vand.u32 31, %v508_v10  ;;  %v310_v38 = vsub.s32 4, %v286_v57 }
  0xc2   : > { %vm289_vm4 = vcmp.lt.s32.totalorder %v288_v45, 0  ;;  %v290_v42 = vsub.s32 0, %v288_v45  ;;  %v410_v48 = vadd.s32 %v409_v15, %v399_v46  ;;  %v380_v40 = vsel %vm374_vm13, %v377_v60, %v379_v20 }
  0xc3   : > { %v423_v51 = vshrl.u32 %v418_v33, 16  ;;  %v432_v1 = vadd.s32 %v431_v54, %v421_v35  ;;  %v1687_v18 = vsub.s32 32, %v510_v36  ;;  %vm1691_vm5 = vcmp.le.f32.partialorder %v186_v29, 0.7853982 }
  0xc4   : > { %vm188_vm6 = vcmp.lt.s32.totalorder %v1507_v23, 0  ;;  %v291_v49 = vsel %vm289_vm4, %v290_v42, %v288_v45  ;;  %v1696_v44 = vadd.s32 %v410_v48, %v401_v32  ;;  %v280_v59 = vadd.s32 %v1629_v43, %v1640_v16 }
  0xc5   : > { %v292_v34 = vclz %v291_v49  ;;  %v1700_v50 = vadd.s32 %v426_v63, %v422_v61  ;;  %v433_v33 = vadd.s32 %v432_v1, %v423_v51  ;;  %v311_v53 = vsel %vm188_vm6, %v310_v38, %v286_v57 }
  0xc6   : > { %v434_v29 = vmul.u32 %v1540_v47, %v380_v40  ;;  %v1705_v55 = vshrl.u32 %v508_v10, 5  ;;  %v1707_v21 = vshll.u32 %v504_v17, 8  ;;  %v514_v43 = vshrl.u32 %v1393_v58, %v1687_v18 }
  0xc7   : > { %v1255_v60 = vadd.s32 4294967294, %v292_v34  ;;  %vm436_vm7 = vc.u32 %v1696_v44, %v1700_v50  ;;  %v437_v52 = vadd.s32 1, %v433_v33  ;;  %v513_v16 = vshll.u32 %v1392_v56, %v510_v36 }
  0xc8   : > { %v517_v61 = vshrl.u32 %v1394_v62, %v1687_v18  ;;  %v520_v47 = vshrl.u32 %v1395_v13, %v1687_v18  ;;  %v523_v63 = vshrl.u32 %v1396_v19, %v1687_v18  ;;  %v516_v20 = vshll.u32 %v1393_v58, %v510_v36 }
  0xc9   : > { %vm1256_vm8 = vcmp.lt.s32.totalorder %v1255_v60, 0  ;;  %v438_v57 = vsel %vm436_vm7, %v437_v52, %v433_v33  ;;  %v522_v37 = vshll.u32 %v1395_v13, %v510_v36  ;;  %v519_v46 = vshll.u32 %v1394_v62, %v510_v36 }
  0xca   : > { %v295_v39 = vsel %vm1256_vm8, 0, %v1255_v60  ;;  %v439_v10 = vadd.s32 %v438_v57, %v434_v29  ;;  %v526_v15 = vshrl.u32 %v1397_v22, %v1687_v18  ;;  %v515_v35 = vor.u32 %v514_v43, %v513_v16 }
  0xcb   : > { %v296_v54 = vsub.s32 32, %v295_v39  ;;  %v300_v32 = vsub.s32 4294967266, %v295_v39  ;;  %v524_v17 = vor.u32 %v523_v63, %v522_v37  ;;  %v518_v38 = vor.u32 %v517_v61, %v516_v20 }
  0xcc   : > { %v440_v42 = vadd.s32 536870912, %v439_v10  ;;  %v521_v48 = vor.u32 %v520_v47, %v519_v46  ;;  %v525_v40 = vshll.u32 %v1396_v19, %v510_v36  ;;  %v297_v51 = vshll.u32 %v288_v45, %v295_v39 }
  0xcd   : > { %v298_v1 = vshrl.u32 %v280_v59, %v296_v54  ;;  %v301_v49 = vadd.s32 127, %v300_v32  ;;  %v313_v34 = vsel %vm1691_vm5, 0, %v311_v53  ;;  %vm528_vm9 = vcmp.lt.s32.totalorder %v1705_v55, 1 }
  0xce   : > { %v1728_v33 = vshrl.u32 %v440_v42, 30  ;;  %v527_v29 = vor.u32 %v526_v15, %v525_v40  ;;  %vm531_vm10 = vcmp.lt.s32.totalorder %v1705_v55, 4  ;;  %vm530_vm11 = vcmp.lt.s32.totalorder %v1705_v55, 3 }
  0xcf   : > { %v299_v60 = vor.u32 %v298_v1, %v297_v51  ;;  %v302_v52 = vshll.u32 %v301_v49, 23  ;;  %v537_v36 = vsel %vm531_vm10, %v524_v17, 920167782  ;;  %v330_v45 = vadd.s32 3, %v313_v34 }
  0xd0   : > { %v442_v59 = vshll.u32 %v1728_v33, 30  ;;  %v536_v53 = vsel %vm528_vm9, %v515_v35, %v518_v38  ;;  %v538_v43 = vsel %vm530_vm11, %v521_v48, %v537_v36  ;;  %v540_v61 = vsel %vm528_vm9, %v518_v38, %v521_v48 }
  0xd1   : > { %v303_v16 = vor.u32 4788187, %v302_v52  ;;  %vm529_vm12 = vcmp.lt.s32.totalorder %v1705_v55, 2  ;;  %v541_v63 = vsel %vm531_vm10, %v527_v29, 1326507024  ;;  %v545_v57 = vand.u32 65535, %v1707_v21 }
  0xd2   : > { %v1742_v47 = vsub.s32 %v439_v10, %v442_v59  ;;  %v306_v37 = vcvt.s32.f32 %v299_v60  ;;  %v539_v39 = vsel %vm529_vm12, %v536_v53, %v538_v43  ;;  %v542_v46 = vsel %vm530_vm11, %v524_v17, %v541_v63 }
  0xd3   : > { %v304_v20 = vand.u32 2147483647, %v303_v16  ;;  %v1752_v15 = vand.u32 3, %v330_v45  ;;  %v543_v54 = vsel %vm529_vm12, %v540_v61, %v542_v46  ;;  %v533_v42 = vsel %vm531_vm10, %v521_v48, 2102212464 }
  0xd4   : > { %vm444_vm13 = vcmp.lt.s32.totalorder %v1742_v47, 0  ;;  %v445_v10 = vsub.s32 0, %v1742_v47  ;;  %v547_v40 = vand.u32 65535, %v543_v54  ;;  %v548_v51 = vshrl.u32 %v543_v54, 16 }
  0xd5   : > { %v307_v32 = vmul.f32 %v306_v37, %v304_v20  ;;  %v512_v17 = vshrl.u32 %v1392_v56, %v1687_v18  ;;  %v546_v49 = vshrl.u32 %v1707_v21, 16  ;;  %v569_v34 = vand.u32 65535, %v539_v39 }
  0xd6   : > { %v446_v1 = vsel %vm444_vm13, %v445_v10, %v1742_v47  ;;  %v435_v60 = vadd.s32 %v1700_v50, %v1696_v44  ;;  %v550_v36 = vmul.u32 %v548_v51, %v545_v57  ;;  %v534_v48 = vsel %vm530_vm11, %v518_v38, %v533_v42 }
  0xd7   : > { %v308_v29 = vxor.u32 2147483648, %v307_v32  ;;  %v447_v52 = vclz %v446_v1  ;;  %v532_v45 = vsel %vm528_vm9, %v512_v17, %v515_v35  ;;  %v1770_v59 = vmul.u32 %v547_v40, %v546_v49 }
  0xd8   : > { %v570_v53 = vshrl.u32 %v539_v39, 16  ;;  %v549_v16 = vmul.u32 %v547_v40, %v545_v57  ;;  %v553_v61 = vshll.u32 %v550_v36, 16  ;;  %v465_v50 = vsub.s32 4, %v1728_v33 }
  0xd9   : > { %v309_v18 = vsel %vm188_vm6, %v308_v29, %v307_v32  ;;  %v1258_v43 = vadd.s32 4294967294, %v447_v52  ;;  %v552_v35 = vmul.u32 %v548_v51, %v546_v49  ;;  %v571_v63 = vmul.u32 %v569_v34, %v545_v57 }
  0xda   : > { %v1777_v44 = vsel %vm1691_vm5, %v1507_v23, %v309_v18  ;;  %vm557_vm15 = vc.u32 %v549_v16, %v553_v61  ;;  %v559_v20 = vadd.s32 %v553_v61, %v549_v16  ;;  %v555_v39 = vshll.u32 %v1770_v59, 16 }
  0xdb   : > { %v314_v38 = vmul.f32 %v1777_v44, %v1777_v44  ;;  %vm1259_vm14 = vcmp.lt.s32.totalorder %v1258_v43, 0  ;;  %v558_v46 = vsel %vm557_vm15, 1, %v1391_v0  ;;  %v572_v10 = vmul.u32 %v570_v53, %v545_v57 }
  0xdc   : > { %v450_v37 = vsel %vm1259_vm14, 0, %v1258_v43  ;;  %v573_v42 = vmul.u32 %v569_v34, %v546_v49  ;;  %vm343_vm0 = vcmp.lt.s32.totalorder %v1511_v24, 0  ;;  %v560_v51 = vadd.s32 %v558_v46, %v552_v35 }
  0xdd   : > { %v315_v54 = vmul.f32 -0.001358992, %v314_v38  ;;  %v322_v30 = vmul.f32 -0.00019511016, %v314_v38  ;;  %v451_v32 = vsub.s32 32, %v450_v37  ;;  %v455_v40 = vsub.s32 4294967266, %v450_v37 }
  0xde   : > { %vm561_vm1 = vc.u32 %v559_v20, %v555_v39  ;;  %v575_v1 = vshll.u32 %v572_v10, 16  ;;  %v452_v43 = vshll.u32 %v1742_v47, %v450_v37  ;;  %v554_v61 = vshrl.u32 %v550_v36, 16 }
  0xdf   : > { %v316_v17 = vadd.f32 0.041655596, %v315_v54  ;;  %v323_v29 = vadd.f32 0.008332121, %v322_v30  ;;  %v453_v52 = vshrl.u32 %v435_v60, %v451_v32  ;;  %v562_v18 = vsel %vm561_vm1, 1, %v1391_v0 }
  0xe0   : > { %v456_v16 = vadd.s32 127, %v455_v40  ;;  %v564_v57 = vadd.s32 %v562_v18, %v560_v51  ;;  %vm1789_vm2 = vcmp.le.f32.partialorder %v341_v31, 0.7853982  ;;  %v574_v35 = vmul.u32 %v570_v53, %v546_v49 }
  0xe1   : > { %v317_v12 = vmul.f32 %v316_v17, %v314_v38  ;;  %v324_v14 = vmul.f32 %v323_v29, %v314_v38  ;;  %v577_v20 = vshll.u32 %v573_v42, 16  ;;  %v454_v39 = vor.u32 %v453_v52, %v452_v43 }
  0xe2   : > { %v457_v46 = vshll.u32 %v456_v16, 23  ;;  %vm579_vm3 = vc.u32 %v571_v63, %v575_v1  ;;  %v581_v60 = vadd.s32 %v575_v1, %v571_v63  ;;  %v565_v37 = vadd.s32 %v564_v57, %v554_v61 }
  0xe3   : > { %v318_v54 = vadd.f32 -0.4999988, %v317_v12  ;;  %v325_v47 = vadd.f32 -0.16666654, %v324_v14  ;;  %v580_v36 = vsel %vm579_vm3, 1, %v1391_v0  ;;  %v535_v32 = vsel %vm529_vm12, %v532_v45, %v534_v48 }
  0xe4   : > { %v458_v30 = vor.u32 4788187, %v457_v46  ;;  %v582_v31 = vadd.s32 %v580_v36, %v574_v35  ;;  %vm583_vm4 = vc.u32 %v581_v60, %v577_v20  ;;  %vm332_vm5 = vcmp.lt.s32.totalorder %v1752_v15, 2 }
  0xe5   : > { %v319_v40 = vmul.f32 %v318_v54, %v314_v38  ;;  %v326_v51 = vmul.f32 %v325_v47, %v314_v38  ;;  %v556_v49 = vshrl.u32 %v1770_v59, 16  ;;  %v584_v53 = vsel %vm583_vm4, 1, %v1391_v0 }
  0xe6   : > { %vm329_vm6 = vweird.f32 %v1507_v23  ;;  %v459_v12 = vand.u32 2147483647, %v458_v30  ;;  %v461_v14 = vcvt.s32.f32 %v454_v39  ;;  %v576_v63 = vshrl.u32 %v572_v10, 16 }
  0xe7   : > { %v586_v1 = vadd.s32 %v584_v53, %v582_v31  ;;  %v320_v55 = vadd.f32 1.0, %v319_v40  ;;  %v327_v45 = vadd.f32 1.0, %v326_v51  ;;  %v466_v48 = vsel %vm343_vm0, %v465_v50, %v1728_v33 }
  0xe8   : > { %v566_v38 = vadd.s32 %v565_v37, %v556_v49  ;;  %v462_v17 = vmul.f32 %v461_v14, %v459_v12  ;;  %v578_v29 = vshrl.u32 %v573_v42, 16  ;;  %v651_v52 = vand.u32 2147483647, %v1515_v25 }
  0xe9   : > { %v587_v59 = vadd.s32 %v586_v1, %v576_v63  ;;  %v328_v18 = vmul.f32 %v327_v45, %v1777_v44  ;;  %v337_v43 = vxor.u32 2147483648, %v320_v55  ;;  %v585_v10 = vadd.s32 %v581_v60, %v577_v20 }
  0xea   : > { %v654_v16 = vand.u32 2139095040, %v1515_v25  ;;  %vm333_vm7 = vcmp.eq.s32.totalorder %v1752_v15, 0  ;;  %v463_v61 = vxor.u32 2147483648, %v462_v17  ;;  %v468_v33 = vsel %vm1789_vm2, 0, %v466_v48 }
  0xeb   : > { %v588_v50 = vadd.s32 %v587_v59, %v578_v29  ;;  %v334_v42 = vxor.u32 2147483648, %v328_v18  ;;  %vm591_vm8 = vc.u32 %v566_v38, %v585_v10  ;;  %v658_v35 = vand.u32 8388607, %v651_v52 }
  0xec   : > { %v655_v57 = vshrl.u32 %v654_v16, 23  ;;  %vm336_vm9 = vcmp.eq.s32.totalorder %v1752_v15, 2  ;;  %v464_v44 = vsel %vm343_vm0, %v463_v61, %v462_v17  ;;  %v589_v20 = vmul.u32 %v1707_v21, %v535_v32 }
  0xed   : > { %v592_v39 = vadd.s32 1, %v588_v50  ;;  %v335_v46 = vsel %vm333_vm7, %v320_v55, %v334_v42  ;;  %v338_v60 = vsel %vm336_vm9, %v337_v43, %v328_v18  ;;  %v467_v54 = vsel %vm1789_vm2, %v1511_v24, %v464_v44 }
  0xee   : > { %v1263_v47 = vadd.s32 4294967169, %v655_v57  ;;  %v339_v37 = vsel %vm332_vm5, %v335_v46, %v338_v60  ;;  %v469_v36 = vmul.f32 %v467_v54, %v467_v54  ;;  %v485_v30 = vadd.s32 3, %v468_v33 }
  0xef   : > { %v593_v31 = vsel %vm591_vm8, %v592_v39, %v588_v50  ;;  %v340_v40 = vsel %vm329_vm6, nan, %v339_v37  ;;  %v659_v21 = vor.u32 8388608, %v658_v35  ;;  %v809_v12 = vand.u32 2139095040, %v1523_v27 }
  0xf0   : > { %v594_v51 = vadd.s32 %v593_v31, %v589_v20  ;;  %v661_v32 = vadd.s32 1, %v1263_v47  ;;  %v470_v49 = vmul.f32 -0.001358992, %v469_v36  ;;  %v477_v53 = vmul.f32 -0.00019511016, %v469_v36  ;;  %1116 = vst [vmem:[%s1829_s4] sm:$0xff] %v340_v40 }
  0xf1   : > { %v486_v63 = vand.u32 3, %v485_v30  ;;  %v1832_v45 = vshll.u32 %v659_v21, 8  ;;  %v810_v29 = vshrl.u32 %v809_v12, 23  ;;  %vm498_vm12 = vcmp.lt.s32.totalorder %v1519_v26, 0 }
  0xf2   : > { %v595_v34 = vadd.s32 536870912, %v594_v51  ;;  %vm662_vm10 = vcmp.gt.s32.totalorder %v661_v32, 0  ;;  %v471_v15 = vadd.f32 0.041655596, %v470_v49  ;;  %v478_v14 = vadd.f32 0.008332121, %v477_v53 }
  0xf3   : > { %v663_v1 = vsel %vm662_vm10, %v661_v32, 0  ;;  %vm491_vm11 = vcmp.eq.s32.totalorder %v486_v63, 2  ;;  %vm488_vm13 = vcmp.eq.s32.totalorder %v486_v63, 0  ;;  %v590_v61 = vadd.s32 %v585_v10, %v566_v38 }
  0xf4   : > { %v596_v55 = vshrl.u32 %v595_v34, 30  ;;  %v665_v23 = vand.u32 31, %v663_v1  ;;  %v472_v48 = vmul.f32 %v471_v15, %v469_v36  ;;  %v479_v17 = vmul.f32 %v478_v14, %v469_v36 }
  0xf5   : > { %v1838_v50 = vand.u32 65535, %v1832_v45  ;;  %v806_v42 = vand.u32 2147483647, %v1523_v27  ;;  %vm487_vm14 = vcmp.lt.s32.totalorder %v486_v63, 2  ;;  %v1841_v44 = vshrl.u32 %v663_v1, 5 }
  0xf6   : > { %v597_v59 = vshll.u32 %v596_v55, 30  ;;  %v666_v18 = vsub.s32 32, %v665_v23  ;;  %v473_v43 = vadd.f32 -0.4999988, %v472_v48  ;;  %v480_v16 = vadd.f32 -0.16666654, %v479_v17 }
  0xf7   : > { %v1266_v20 = vadd.s32 4294967169, %v810_v29  ;;  %vm484_vm15 = vweird.f32 %v1511_v24  ;;  %v620_v38 = vsub.s32 4, %v596_v55  ;;  %v668_v30 = vshll.u32 %v1392_v56, %v665_v23 }
  0xf8   : > { %v1835_v33 = vsub.s32 %v594_v51, %v597_v59  ;;  %v474_v57 = vmul.f32 %v473_v43, %v469_v36  ;;  %v481_v35 = vmul.f32 %v480_v16, %v469_v36  ;;  %v669_v10 = vshrl.u32 %v1393_v58, %v666_v18 }
  0xf9   : > { %v672_v47 = vshrl.u32 %v1394_v62, %v666_v18  ;;  %v675_v37 = vshrl.u32 %v1395_v13, %v666_v18  ;;  %v671_v31 = vshll.u32 %v1393_v58, %v665_v23  ;;  %v678_v40 = vshrl.u32 %v1396_v19, %v666_v18 }
  0xfa   : > { %vm599_vm0 = vcmp.lt.s32.totalorder %v1835_v33, 0  ;;  %v600_v39 = vsub.s32 0, %v1835_v33  ;;  %v475_v46 = vadd.f32 1.0, %v474_v57  ;;  %v482_v60 = vadd.f32 1.0, %v481_v35 }
  0xfb   : > { %v674_v49 = vshll.u32 %v1394_v62, %v665_v23  ;;  %v1856_v53 = vsel %vm498_vm12, %v620_v38, %v596_v55  ;;  %v667_v12 = vshrl.u32 %v1392_v56, %v666_v18  ;;  %v670_v34 = vor.u32 %v669_v10, %v668_v30 }
  0xfc   : > { %v601_v36 = vsel %vm599_vm0, %v600_v39, %v1835_v33  ;;  %v483_v51 = vmul.f32 %v482_v60, %v467_v54  ;;  %v492_v21 = vxor.u32 2147483648, %v475_v46  ;;  %v677_v15 = vshll.u32 %v1395_v13, %v665_v23 }
  0xfd   : > { %v602_v32 = vclz %v601_v36  ;;  %v673_v48 = vor.u32 %v672_v47, %v671_v31  ;;  %v676_v17 = vor.u32 %v675_v37, %v674_v49  ;;  %v680_v59 = vshll.u32 %v1396_v19, %v665_v23 }
  0xfe   : > { %v489_v14 = vxor.u32 2147483648, %v483_v51  ;;  %v493_v29 = vsel %vm491_vm11, %v492_v21, %v483_v51  ;;  %v679_v54 = vor.u32 %v678_v40, %v677_v15  ;;  %v681_v43 = vshrl.u32 %v1397_v22, %v666_v18 }
  0xff   : > { %v1261_v1 = vadd.s32 4294967294, %v602_v32  ;;  %vm1866_vm1 = vcmp.le.f32.partialorder %v496_v41, 0.7853982  ;;  %vm683_vm3 = vcmp.lt.s32.totalorder %v1841_v44, 1  ;;  %vm684_vm4 = vcmp.lt.s32.totalorder %v1841_v44, 2 }
 0x100   : > { %v490_v16 = vsel %vm488_vm13, %v475_v46, %v489_v14  ;;  %v682_v23 = vor.u32 %v681_v43, %v680_v59  ;;  %vm686_vm5 = vcmp.lt.s32.totalorder %v1841_v44, 4  ;;  %vm685_vm6 = vcmp.lt.s32.totalorder %v1841_v44, 3 }
 0x101   : > { %vm1262_vm2 = vcmp.lt.s32.totalorder %v1261_v1, 0  ;;  %v494_v57 = vsel %vm487_vm14, %v490_v16, %v493_v29  ;;  %v688_v38 = vsel %vm686_vm5, %v676_v17, 2102212464  ;;  %v691_v63 = vsel %vm683_vm3, %v670_v34, %v673_v48 }
 0x102   : > { %v605_v35 = vsel %vm1262_vm2, 0, %v1261_v1  ;;  %v495_v18 = vsel %vm484_vm15, nan, %v494_v57  ;;  %v692_v46 = vsel %vm686_vm5, %v679_v54, 920167782  ;;  %v695_v37 = vsel %vm683_vm3, %v673_v48, %v676_v17 }
 0x103   : > { %v606_v39 = vsub.s32 32, %v605_v35  ;;  %v610_v41 = vsub.s32 4294967266, %v605_v35  ;;  %v607_v10 = vshll.u32 %v1835_v33, %v605_v35  ;;  %1117 = vst [vmem:[%s1829_s4 + $0x8] sm:$0xff] %v495_v18  ;;  %v693_v24 = vsel %vm685_vm6, %v676_v17, %v692_v46 }
 0x104   : > { %v687_v36 = vsel %vm683_vm3, %v667_v12, %v670_v34  ;;  %v689_v30 = vsel %vm685_vm6, %v673_v48, %v688_v38  ;;  %v694_v33 = vsel %vm684_vm4, %v691_v63, %v693_v24  ;;  %v696_v31 = vsel %vm686_vm5, %v682_v23, 1326507024 }
 0x105   : > { %v608_v60 = vshrl.u32 %v590_v61, %v606_v39  ;;  %v611_v47 = vadd.s32 127, %v610_v41  ;;  %v697_v21 = vsel %vm685_vm6, %v679_v54, %v696_v31  ;;  %v724_v32 = vand.u32 65535, %v694_v33 }
 0x106   : > { %v698_v61 = vsel %vm684_vm4, %v695_v37, %v697_v21  ;;  %v701_v49 = vshrl.u32 %v1832_v45, 16  ;;  %v725_v15 = vshrl.u32 %v694_v33, 16  ;;  %v816_v14 = vadd.s32 1, %v1266_v20 }
 0x107   : > { %v609_v40 = vor.u32 %v608_v60, %v607_v10  ;;  %v612_v51 = vshll.u32 %v611_v47, 23  ;;  %v702_v12 = vand.u32 65535, %v698_v61  ;;  %v703_v34 = vshrl.u32 %v698_v61, 16 }
 0x108   : > { %v1898_v48 = vand.u32 8388607, %v806_v42  ;;  %v623_v17 = vsel %vm1866_vm1, 0, %v1856_v53  ;;  %v1905_v29 = vsel %vm684_vm4, %v687_v36, %v689_v30  ;;  %v727_v54 = vmul.u32 %v725_v15, %v1838_v50 }
 0x109   : > { %v613_v1 = vor.u32 4788187, %v612_v51  ;;  %v728_v59 = vmul.u32 %v724_v32, %v701_v49  ;;  %v616_v20 = vcvt.s32.f32 %v609_v40  ;;  %v705_v16 = vmul.u32 %v703_v34, %v1838_v50 }
 0x10a   : > { %v706_v57 = vmul.u32 %v702_v12, %v701_v49  ;;  %v726_v35 = vmul.u32 %v724_v32, %v1838_v50  ;;  %v729_v23 = vmul.u32 %v725_v15, %v701_v49  ;;  %v730_v18 = vshll.u32 %v727_v54, 16 }
 0x10b   : > { %v614_v43 = vand.u32 2147483647, %v613_v1  ;;  %vm817_vm7 = vcmp.gt.s32.totalorder %v816_v14, 0  ;;  %v704_v53 = vmul.u32 %v702_v12, %v1838_v50  ;;  %v707_v41 = vmul.u32 %v703_v34, %v701_v49 }
 0x10c   : > { %v708_v44 = vshll.u32 %v705_v16, 16  ;;  %v710_v38 = vshll.u32 %v706_v57, 16  ;;  %v732_v10 = vshll.u32 %v728_v59, 16  ;;  %vm734_vm8 = vc.u32 %v726_v35, %v730_v18 }
 0x10d   : > { %v617_v39 = vmul.f32 %v616_v20, %v614_v43  ;;  %v736_v63 = vadd.s32 %v730_v18, %v726_v35  ;;  %v735_v47 = vsel %vm734_vm8, 1, %v1391_v0  ;;  %v731_v37 = vshrl.u32 %v727_v54, 16 }
 0x10e   : > { %vm712_vm9 = vc.u32 %v704_v53, %v708_v44  ;;  %v714_v60 = vadd.s32 %v708_v44, %v704_v53  ;;  %v737_v36 = vadd.s32 %v735_v47, %v729_v23  ;;  %v818_v21 = vsel %vm817_vm7, %v816_v14, 0 }
 0x10f   : > { %v618_v46 = vxor.u32 2147483648, %v617_v39  ;;  %v713_v24 = vsel %vm712_vm9, 1, %v1391_v0  ;;  %vm738_vm10 = vc.u32 %v736_v63, %v732_v10  ;;  %v709_v61 = vshrl.u32 %v705_v16, 16 }
 0x110   : > { %v715_v50 = vadd.s32 %v713_v24, %v707_v41  ;;  %vm716_vm11 = vc.u32 %v714_v60, %v710_v38  ;;  %v739_v33 = vsel %vm738_vm10, 1, %v1391_v0  ;;  %v820_v15 = vand.u32 31, %v818_v21 }
 0x111   : > { %v619_v30 = vsel %vm498_vm12, %v618_v46, %v617_v39  ;;  %v717_v40 = vsel %vm716_vm11, 1, %v1391_v0  ;;  %v741_v51 = vadd.s32 %v739_v33, %v737_v36  ;;  %v711_v1 = vshrl.u32 %v706_v57, 16 }
 0x112   : > { %v622_v31 = vsel %vm1866_vm1, %v1519_v26, %v619_v30  ;;  %v719_v49 = vadd.s32 %v717_v40, %v715_v50  ;;  %v733_v12 = vshrl.u32 %v728_v59, 16  ;;  %v1921_v35 = vsub.s32 32, %v820_v15 }
 0x113   : > { %v624_v32 = vmul.f32 %v622_v31, %v622_v31  ;;  %v742_v34 = vadd.s32 %v741_v51, %v731_v37  ;;  %v640_v23 = vadd.s32 3, %v623_v17  ;;  %v744_v18 = vmul.u32 %v1832_v45, %v1905_v29 }
 0x114   : > { %v720_v20 = vadd.s32 %v719_v49, %v709_v61  ;;  %v814_v39 = vor.u32 8388608, %v1898_v48  ;;  %v1928_v41 = vadd.s32 %v736_v63, %v732_v10  ;;  %v1930_v57 = vshrl.u32 %v818_v21, 5 }
 0x115   : > { %v625_v54 = vmul.f32 -0.001358992, %v624_v32  ;;  %v632_v43 = vmul.f32 -0.00019511016, %v624_v32  ;;  %v743_v55 = vadd.s32 %v742_v34, %v733_v12  ;;  %v823_v44 = vshll.u32 %v1392_v56, %v820_v15 }
 0x116   : > { %v1926_v16 = vadd.s32 %v720_v20, %v711_v1  ;;  %v824_v17 = vshrl.u32 %v1393_v58, %v1921_v35  ;;  %v827_v45 = vshrl.u32 %v1394_v62, %v1921_v35  ;;  %v826_v29 = vshll.u32 %v1393_v58, %v820_v15 }
 0x117   : > { %v626_v14 = vadd.f32 0.041655596, %v625_v54  ;;  %v633_v53 = vadd.f32 0.008332121, %v632_v43  ;;  %v747_v59 = vadd.s32 1, %v743_v55  ;;  %v829_v10 = vshll.u32 %v1394_v62, %v820_v15 }
 0x118   : > { %vm746_vm12 = vc.u32 %v1926_v16, %v1928_v41  ;;  %v830_v63 = vshrl.u32 %v1395_v13, %v1921_v35  ;;  %v825_v37 = vor.u32 %v824_v17, %v823_v44  ;;  %v832_v36 = vshll.u32 %v1395_v13, %v820_v15 }
 0x119   : > { %v627_v38 = vmul.f32 %v626_v14, %v624_v32  ;;  %v634_v46 = vmul.f32 %v633_v53, %v624_v32  ;;  %v748_v48 = vsel %vm746_vm12, %v747_v59, %v743_v55  ;;  %v833_v30 = vshrl.u32 %v1396_v19, %v1921_v35 }
 0x11a   : > { %v749_v24 = vadd.s32 %v748_v48, %v744_v18  ;;  %v835_v50 = vshll.u32 %v1396_v19, %v820_v15  ;;  %v836_v33 = vshrl.u32 %v1397_v22, %v1921_v35  ;;  %v1949_v61 = vor.u32 %v827_v45, %v826_v29 }
 0x11b   : > { %v628_v60 = vadd.f32 -0.4999988, %v627_v38  ;;  %v635_v47 = vadd.f32 -0.16666654, %v634_v46  ;;  %v641_v49 = vand.u32 3, %v640_v23  ;;  %v1951_v1 = vor.u32 %v830_v63, %v829_v10 }
 0x11c   : > { %v750_v21 = vadd.s32 536870912, %v749_v24  ;;  %v834_v12 = vor.u32 %v833_v30, %v832_v36  ;;  %v837_v34 = vor.u32 %v836_v33, %v835_v50  ;;  %vm841_vm13 = vcmp.lt.s32.totalorder %v1930_v57, 4 }
 0x11d   : > { %v629_v40 = vmul.f32 %v628_v60, %v624_v32  ;;  %v636_v51 = vmul.f32 %v635_v47, %v624_v32  ;;  %vm639_vm14 = vweird.f32 %v1519_v26  ;;  %vm838_vm15 = vcmp.lt.s32.totalorder %v1930_v57, 1 }
 0x11e   : > { %v1953_v20 = vshrl.u32 %v750_v21, 30  ;;  %vm840_vm0 = vcmp.lt.s32.totalorder %v1930_v57, 3  ;;  %v847_v32 = vsel %vm841_vm13, %v834_v12, 920167782  ;;  %v846_v18 = vsel %vm838_vm15, %v825_v37, %v1949_v61 }
 0x11f   : > { %v630_v54 = vadd.f32 1.0, %v629_v40  ;;  %v637_v43 = vadd.f32 1.0, %v636_v51  ;;  %vm642_vm1 = vcmp.lt.s32.totalorder %v641_v49, 2  ;;  %v848_v14 = vsel %vm840_vm0, %v1951_v1, %v847_v32 }
 0x120   : > { %v752_v55 = vshll.u32 %v1953_v20, 30  ;;  %v851_v53 = vsel %vm841_vm13, %v837_v34, 1326507024  ;;  %v1970_v59 = vshll.u32 %v814_v39, 8  ;;  %vm839_vm2 = vcmp.lt.s32.totalorder %v1930_v57, 2 }
 0x121   : > { %v638_v15 = vmul.f32 %v637_v43, %v622_v31  ;;  %v647_v23 = vxor.u32 2147483648, %v630_v54  ;;  %v850_v31 = vsel %vm838_vm15, %v1949_v61, %v1951_v1  ;;  %vm643_vm3 = vcmp.eq.s32.totalorder %v641_v49, 0 }
 0x122   : > { %v753_v17 = vsub.s32 %v749_v24, %v752_v55  ;;  %vm646_vm4 = vcmp.eq.s32.totalorder %v641_v49, 2  ;;  %v849_v38 = vsel %vm839_vm2, %v846_v18, %v848_v14  ;;  %v852_v46 = vsel %vm840_vm0, %v834_v12, %v851_v53 }
 0x123   : > { %v644_v44 = vxor.u32 2147483648, %v638_v15  ;;  %v648_v39 = vsel %vm646_vm4, %v647_v23, %v638_v15  ;;  %v853_v10 = vsel %vm839_vm2, %v850_v31, %v852_v46  ;;  %v855_v63 = vand.u32 65535, %v1970_v59 }
 0x124   : > { %vm754_vm5 = vcmp.lt.s32.totalorder %v753_v17, 0  ;;  %v755_v48 = vsub.s32 0, %v753_v17  ;;  %v880_v60 = vshrl.u32 %v849_v38, 16  ;;  %v857_v36 = vand.u32 65535, %v853_v10 }
 0x125   : > { %v645_v45 = vsel %vm643_vm3, %v630_v54, %v644_v44  ;;  %v879_v30 = vand.u32 65535, %v849_v38  ;;  %v856_v33 = vshrl.u32 %v1970_v59, 16  ;;  %v858_v40 = vshrl.u32 %v853_v10, 16 }
 0x126   : > { %v649_v29 = vsel %vm642_vm1, %v645_v45, %v648_v39  ;;  %v756_v24 = vsel %vm754_vm5, %v755_v48, %v753_v17  ;;  %v882_v51 = vmul.u32 %v880_v60, %v855_v63  ;;  %v822_v21 = vshrl.u32 %v1392_v56, %v1921_v35 }
 0x127   : > { %v650_v47 = vsel %vm639_vm14, nan, %v649_v29  ;;  %v757_v50 = vclz %v756_v24  ;;  %v745_v49 = vadd.s32 %v1928_v41, %v1926_v16  ;;  %v860_v34 = vmul.u32 %v858_v40, %v855_v63 }
 0x128   : > { %1118 = vst [vmem:[%s1829_s4 + $0x10] sm:$0xff] %v650_v47  ;;  %v861_v54 = vmul.u32 %v857_v36, %v856_v33  ;;  %v842_v26 = vsel %vm838_vm15, %v822_v21, %v825_v37  ;;  %v881_v43 = vmul.u32 %v879_v30, %v855_v63  ;;  %v883_v32 = vmul.u32 %v879_v30, %v856_v33 }
 0x129   : > { %v1264_v12 = vadd.s32 4294967294, %v757_v50  ;;  %v885_v15 = vshll.u32 %v882_v51, 16  ;;  %v859_v23 = vmul.u32 %v857_v36, %v855_v63  ;;  %v862_v55 = vmul.u32 %v858_v40, %v856_v33 }
 0x12a   : > { %v863_v18 = vshll.u32 %v860_v34, 16  ;;  %v865_v53 = vshll.u32 %v861_v54, 16  ;;  %v884_v44 = vmul.u32 %v880_v60, %v856_v33  ;;  %v887_v35 = vshll.u32 %v883_v32, 16 }
 0x12b   : > { %vm1265_vm6 = vcmp.lt.s32.totalorder %v1264_v12, 0  ;;  %vm889_vm8 = vc.u32 %v881_v43, %v885_v15  ;;  %v891_v37 = vadd.s32 %v885_v15, %v881_v43  ;;  %v843_v10 = vsel %vm841_vm13, %v1951_v1, 2102212464 }
 0x12c   : > { %v760_v14 = vsel %vm1265_vm6, 0, %v1264_v12  ;;  %vm867_vm7 = vc.u32 %v859_v23, %v863_v18  ;;  %v869_v46 = vadd.s32 %v863_v18, %v859_v23  ;;  %v890_v29 = vsel %vm889_vm8, 1, %v1391_v0 }
 0x12d   : > { %v761_v31 = vsub.s32 32, %v760_v14  ;;  %v762_v38 = vshll.u32 %v753_v17, %v760_v14  ;;  %v765_v16 = vsub.s32 4294967266, %v760_v14  ;;  %v868_v41 = vsel %vm867_vm7, 1, %v1391_v0 }
 0x12e   : > { %v870_v48 = vadd.s32 %v868_v41, %v862_v55  ;;  %vm871_vm9 = vc.u32 %v869_v46, %v865_v53  ;;  %v892_v63 = vadd.s32 %v890_v29, %v884_v44  ;;  %vm893_vm10 = vc.u32 %v891_v37, %v887_v35 }
 0x12f   : > { %v763_v45 = vshrl.u32 %v745_v49, %v761_v31  ;;  %v766_v39 = vadd.s32 127, %v765_v16  ;;  %v872_v47 = vsel %vm871_vm9, 1, %v1391_v0  ;;  %v894_v24 = vsel %vm893_vm10, 1, %v1391_v0 }
 0x130   : > { %v864_v36 = vshrl.u32 %v860_v34, 16  ;;  %v874_v30 = vadd.s32 %v872_v47, %v870_v48  ;;  %v886_v50 = vshrl.u32 %v882_v51, 16  ;;  %v896_v33 = vadd.s32 %v894_v24, %v892_v63 }
 0x131   : > { %v764_v17 = vor.u32 %v763_v45, %v762_v38  ;;  %v767_v60 = vshll.u32 %v766_v39, 23  ;;  %v775_v21 = vsub.s32 4, %v1953_v20  ;;  %v844_v1 = vsel %vm840_vm0, %v1949_v61, %v843_v10 }
 0x132   : > { %v964_v49 = vand.u32 2139095040, %v1527_v28  ;;  %v866_v12 = vshrl.u32 %v861_v54, 16  ;;  %v875_v43 = vadd.s32 %v874_v30, %v864_v36  ;;  %v888_v15 = vshrl.u32 %v883_v32, 16 }
 0x133   : > { %v768_v40 = vor.u32 4788187, %v767_v60  ;;  %v897_v23 = vadd.s32 %v896_v33, %v886_v50  ;;  %vm653_vm11 = vcmp.lt.s32.totalorder %v1515_v25, 0  ;;  %v771_v34 = vcvt.s32.f32 %v764_v17 }
 0x134   : > { %v965_v18 = vshrl.u32 %v964_v49, 23  ;;  %v845_v51 = vsel %vm839_vm2, %v842_v26, %v844_v1  ;;  %v2010_v14 = vadd.s32 %v875_v43, %v866_v12  ;;  %v2012_v53 = vadd.s32 %v891_v37, %v887_v35 }
 0x135   : > { %v769_v55 = vand.u32 2147483647, %v768_v40  ;;  %v898_v44 = vadd.s32 %v897_v23, %v888_v15  ;;  %v776_v54 = vsel %vm653_vm11, %v775_v21, %v1953_v20  ;;  %v961_v32 = vand.u32 2147483647, %v1527_v28 }
 0x136   : > { %v1269_v31 = vadd.s32 4294967169, %v965_v18  ;;  %vm901_vm12 = vc.u32 %v2010_v14, %v2012_v53  ;;  %vm652_vm13 = vcmp.le.f32.partialorder %v651_v52, 0.7853982  ;;  %v899_v26 = vmul.u32 %v1970_v59, %v845_v51 }
 0x137   : > { %v772_v61 = vmul.f32 %v771_v34, %v769_v55  ;;  %v902_v38 = vadd.s32 1, %v898_v44  ;;  %v778_v16 = vsel %vm652_vm13, 0, %v776_v54  ;;  %v968_v37 = vand.u32 8388607, %v961_v32 }
 0x138   : > { %v971_v35 = vadd.s32 1, %v1269_v31  ;;  %v795_v29 = vadd.s32 3, %v778_v16  ;;  %vm794_vm3 = vweird.f32 %v1515_v25  ;;  %vm808_vm9 = vcmp.lt.s32.totalorder %v1523_v27, 0 }
 0x139   : > { %v773_v57 = vxor.u32 2147483648, %v772_v61  ;;  %v903_v41 = vsel %vm901_vm12, %v902_v38, %v898_v44  ;;  %v969_v60 = vor.u32 8388608, %v968_v37  ;;  %v900_v37 = vadd.s32 %v2012_v53, %v2010_v14 }
 0x13a   : > { %v904_v20 = vadd.s32 %v903_v41, %v899_v26  ;;  %vm972_vm14 = vcmp.gt.s32.totalorder %v971_v35, 0  ;;  %v796_v30 = vand.u32 3, %v795_v29  ;;  %vm2099_vm10 = vcmp.le.f32.partialorder %v806_v42, 0.7853982 }
 0x13b   : > { %v774_v46 = vsel %vm653_vm11, %v773_v57, %v772_v61  ;;  %v973_v39 = vsel %vm972_vm14, %v971_v35, 0  ;;  %v2035_v1 = vshll.u32 %v969_v60, 8 }
 0x13c   : > { %v777_v45 = vsel %vm652_vm13, %v1515_v25, %v774_v46  ;;  %v905_v52 = vadd.s32 536870912, %v904_v20  ;;  %v975_v10 = vand.u32 31, %v973_v39  ;;  %v2037_v49 = vshrl.u32 %v973_v39, 5 }
 0x13d   : > { %v779_v48 = vmul.f32 %v777_v45, %v777_v45  ;;  %vm801_vm15 = vcmp.eq.s32.totalorder %v796_v30, 2  ;;  %vm798_vm1 = vcmp.eq.s32.totalorder %v796_v30, 0  ;;  %vm797_vm2 = vcmp.lt.s32.totalorder %v796_v30, 2 }
 0x13e   : > { %v2028_v17 = vshrl.u32 %v905_v52, 30  ;;  %v2030_v47 = vsub.s32 32, %v975_v10  ;;  %v978_v12 = vshll.u32 %v1392_v56, %v975_v10  ;;  %v981_v18 = vshll.u32 %v1393_v58, %v975_v10 }
 0x13f   : > { %v780_v63 = vmul.f32 -0.001358992, %v779_v48  ;;  %v787_v59 = vmul.f32 -0.00019511016, %v779_v48  ;;  %v987_v44 = vshll.u32 %v1395_v13, %v975_v10  ;;  %v984_v35 = vshll.u32 %v1394_v62, %v975_v10 }
 0x140   : > { %v907_v50 = vshll.u32 %v2028_v17, 30  ;;  %v979_v43 = vshrl.u32 %v1393_v58, %v2030_v47  ;;  %v982_v15 = vshrl.u32 %v1394_v62, %v2030_v47  ;;  %v985_v51 = vshrl.u32 %v1395_v13, %v2030_v47 }
 0x141   : > { %v781_v24 = vadd.f32 0.041655596, %v780_v63  ;;  %v788_v36 = vadd.f32 0.008332121, %v787_v59  ;;  %v988_v61 = vshrl.u32 %v1396_v19, %v2030_v47  ;;  %v991_v57 = vshrl.u32 %v1397_v22, %v2030_v47 }
 0x142   : > { %v2033_v21 = vsub.s32 %v904_v20, %v907_v50  ;;  %v2056_v58 = vor.u32 %v979_v43, %v978_v12  ;;  %v2059_v46 = vor.u32 %v982_v15, %v981_v18  ;;  %v990_v20 = vshll.u32 %v1396_v19, %v975_v10 }
 0x143   : > { %v782_v33 = vmul.f32 %v781_v24, %v779_v48  ;;  %v789_v40 = vmul.f32 %v788_v36, %v779_v48  ;;  %v989_v16 = vor.u32 %v988_v61, %v987_v44  ;;  %v1010_v22 = vand.u32 65535, %v2035_v1 }
 0x144   : > { %vm909_vm0 = vcmp.lt.s32.totalorder %v2033_v21, 0  ;;  %v910_v34 = vsub.s32 0, %v2033_v21  ;;  %v992_v63 = vor.u32 %v991_v57, %v990_v20  ;;  %vm996_vm4 = vcmp.lt.s32.totalorder %v2037_v49, 4 }
 0x145   : > { %v783_v23 = vadd.f32 -0.4999988, %v782_v33  ;;  %v790_v55 = vadd.f32 -0.16666654, %v789_v40  ;;  %vm993_vm6 = vcmp.lt.s32.totalorder %v2037_v49, 1  ;;  %vm994_vm7 = vcmp.lt.s32.totalorder %v2037_v49, 2 }
 0x146   : > { %v911_v38 = vsel %vm909_vm0, %v910_v34, %v2033_v21  ;;  %v1002_v62 = vsel %vm996_vm4, %v989_v16, 920167782  ;;  %vm995_vm8 = vcmp.lt.s32.totalorder %v2037_v49, 3  ;;  %v1001_v14 = vsel %vm993_vm6, %v2056_v58, %v2059_v46 }
 0x147   : > { %v784_v54 = vmul.f32 %v783_v23, %v779_v48  ;;  %v791_v31 = vmul.f32 %v790_v55, %v779_v48  ;;  %v912_v26 = vclz %v911_v38  ;;  %v986_v48 = vor.u32 %v985_v51, %v984_v35 }
 0x148   : > { %v1006_v33 = vsel %vm996_vm4, %v992_v63, 1326507024  ;;  %v1011_v30 = vshrl.u32 %v2035_v1, 16  ;;  %v930_v57 = vsub.s32 4, %v2028_v17  ;;  %v977_v35 = vshrl.u32 %v1392_v56, %v2030_v47 }
 0x149   : > { %v785_v13 = vadd.f32 1.0, %v784_v54  ;;  %v792_v41 = vadd.f32 1.0, %v791_v31  ;;  %v1267_v39 = vadd.s32 4294967294, %v912_v26  ;;  %v1003_v36 = vsel %vm995_vm8, %v986_v48, %v1002_v62 }
 0x14a   : > { %v1005_v50 = vsel %vm993_vm6, %v2059_v46, %v986_v48  ;;  %v1007_v23 = vsel %vm995_vm8, %v989_v16, %v1006_v33  ;;  %v998_v16 = vsel %vm996_vm4, %v986_v48, 2102212464  ;;  %vm949_vm4 = vweird.f32 %v1523_v27 }
 0x14b   : > { %v793_v29 = vmul.f32 %v792_v41, %v777_v45  ;;  %v802_v52 = vxor.u32 2147483648, %v785_v13  ;;  %vm1268_vm5 = vcmp.lt.s32.totalorder %v1267_v39, 0  ;;  %v1008_v44 = vsel %vm994_vm7, %v1005_v50, %v1007_v23 }
 0x14c   : > { %v915_v10 = vsel %vm1268_vm5, 0, %v1267_v39  ;;  %v1012_v61 = vand.u32 65535, %v1008_v44  ;;  %v1013_v54 = vshrl.u32 %v1008_v44, 16 }
 0x14d   : > { %v799_v19 = vxor.u32 2147483648, %v793_v29  ;;  %v803_v53 = vsel %vm801_vm15, %v802_v52, %v793_v29  ;;  %v916_v45 = vsub.s32 32, %v915_v10  ;;  %v917_v59 = vshll.u32 %v2033_v21, %v915_v10 }
 0x14e   : > { %v920_v60 = vsub.s32 4294967266, %v915_v10  ;;  %v1004_v21 = vsel %vm994_vm7, %v1001_v14, %v1003_v36  ;;  %v1016_v41 = vmul.u32 %v1012_v61, %v1011_v30  ;;  %v1014_v42 = vmul.u32 %v1012_v61, %v1010_v22 }
 0x14f   : > { %v800_v24 = vsel %vm798_vm1, %v785_v13, %v799_v19  ;;  %v918_v12 = vshrl.u32 %v900_v37, %v916_v45  ;;  %v1034_v55 = vand.u32 65535, %v1004_v21  ;;  %v1035_v34 = vshrl.u32 %v1004_v21, 16 }
 0x150   : > { %v804_v40 = vsel %vm797_vm2, %v800_v24, %v803_v53  ;;  %v921_v43 = vadd.s32 127, %v920_v60  ;;  %v1015_v13 = vmul.u32 %v1013_v54, %v1010_v22  ;;  %v1017_v52 = vmul.u32 %v1013_v54, %v1011_v30 }
 0x151   : > { %v805_v15 = vsel %vm794_vm3, nan, %v804_v40  ;;  %v919_v18 = vor.u32 %v918_v12, %v917_v59  ;;  %v1037_v31 = vmul.u32 %v1035_v34, %v1010_v22  ;;  %v1038_v26 = vmul.u32 %v1034_v55, %v1011_v30 }
 0x152   : > { %v922_v51 = vshll.u32 %v921_v43, 23  ;;  %1119 = vst [vmem:[%s1829_s4 + $0x18] sm:$0xff] %v805_v15  ;;  %v1036_v39 = vmul.u32 %v1034_v55, %v1010_v22  ;;  %v1018_v63 = vshll.u32 %v1015_v13, 16  ;;  %v1039_v62 = vmul.u32 %v1035_v34, %v1011_v30 }
 0x153   : > { %v926_v37 = vcvt.s32.f32 %v919_v18  ;;  %v1040_v29 = vshll.u32 %v1037_v31, 16  ;;  %v1042_v10 = vshll.u32 %v1038_v26, 16  ;;  %v1020_v53 = vshll.u32 %v1016_v41, 16 }
 0x154   : > { %v923_v38 = vor.u32 4788187, %v922_v51  ;;  %vm1022_vm12 = vc.u32 %v1014_v42, %v1018_v63  ;;  %v1024_v56 = vadd.s32 %v1018_v63, %v1014_v42  ;;  %v997_v22 = vsel %vm993_vm6, %v977_v35, %v2056_v58 }
 0x155   : > { %vm1044_vm11 = vc.u32 %v1036_v39, %v1040_v29  ;;  %v1046_v14 = vadd.s32 %v1040_v29, %v1036_v39  ;;  %v1023_v45 = vsel %vm1022_vm12, 1, %v1391_v0  ;;  %v1041_v33 = vshrl.u32 %v1037_v31, 16 }
 0x156   : > { %v924_v20 = vand.u32 2147483647, %v923_v38  ;;  %v1045_v47 = vsel %vm1044_vm11, 1, %v1391_v0  ;;  %v1025_v60 = vadd.s32 %v1023_v45, %v1017_v52  ;;  %vm1026_vm14 = vc.u32 %v1024_v56, %v1020_v53 }
 0x157   : > { %v1047_v59 = vadd.s32 %v1045_v47, %v1039_v62  ;;  %vm1048_vm13 = vc.u32 %v1046_v14, %v1042_v10  ;;  %v1027_v50 = vsel %vm1026_vm14, 1, %v1391_v0  ;;  %v999_v43 = vsel %vm995_vm8, %v2059_v46, %v998_v16 }
 0x158   : > { %v927_v19 = vmul.f32 %v926_v37, %v924_v20  ;;  %v1049_v24 = vsel %vm1048_vm13, 1, %v1391_v0  ;;  %v1019_v58 = vshrl.u32 %v1015_v13, 16  ;;  %v1029_v21 = vadd.s32 %v1027_v50, %v1025_v60 }
 0x159   : > { %v1051_v40 = vadd.s32 %v1049_v24, %v1047_v59  ;;  %v1043_v23 = vshrl.u32 %v1038_v26, 16  ;;  %v1021_v34 = vshrl.u32 %v1016_v41, 16  ;;  %v1000_v0 = vsel %vm994_vm7, %v997_v22, %v999_v43 }
 0x15a   : > { %v928_v48 = vxor.u32 2147483648, %v927_v19  ;;  %v1030_v18 = vadd.s32 %v1029_v21, %v1019_v58  ;;  %v931_v61 = vsel %vm808_vm9, %v930_v57, %v2028_v17  ;;  %v1050_v31 = vadd.s32 %v1046_v14, %v1042_v10 }
 0x15b   : > { %v1052_v55 = vadd.s32 %v1051_v40, %v1041_v33  ;;  %v1054_v26 = vmul.u32 %v2035_v1, %v1000_v0  ;;  %v933_v16 = vsel %vm2099_vm10, 0, %v931_v61  ;;  %vm963_vm6 = vcmp.lt.s32.totalorder %v1527_v28, 0 }
 0x15c   : > { %v929_v36 = vsel %vm808_vm9, %v928_v48, %v927_v19  ;;  %v1031_v54 = vadd.s32 %v1030_v18, %v1021_v34  ;;  %v950_v29 = vadd.s32 3, %v933_v16  ;;  %vm962_vm7 = vcmp.le.f32.partialorder %v961_v32, 0.7853982 }
 0x15d   : > { %v932_v12 = vsel %vm2099_vm10, %v1523_v27, %v929_v36  ;;  %v1053_v30 = vadd.s32 %v1052_v55, %v1043_v23  ;;  %vm1104_vm11 = vweird.f32 %v1527_v28 }
 0x15e   : > { %v934_v15 = vmul.f32 %v932_v12, %v932_v12  ;;  %vm1056_vm15 = vc.u32 %v1031_v54, %v1050_v31  ;;  %v951_v19 = vand.u32 3, %v950_v29  ;;  %v1055_v50 = vadd.s32 %v1050_v31, %v1031_v54 }
 0x15f   : > { %v1057_v35 = vadd.s32 1, %v1053_v30 }
 0x160   : > { %v935_v51 = vmul.f32 -0.001358992, %v934_v15  ;;  %v942_v44 = vmul.f32 -0.00019511016, %v934_v15  ;;  %vm953_vm0 = vcmp.eq.s32.totalorder %v951_v19, 0  ;;  %vm956_vm1 = vcmp.eq.s32.totalorder %v951_v19, 2 }
 0x161   : > { %v1058_v49 = vsel %vm1056_vm15, %v1057_v35, %v1053_v30  ;;  %vm952_vm3 = vcmp.lt.s32.totalorder %v951_v19, 2 }
 0x162   : > { %v936_v46 = vadd.f32 0.041655596, %v935_v51  ;;  %v943_v38 = vadd.f32 0.008332121, %v942_v44  ;;  %v1059_v20 = vadd.s32 %v1058_v49, %v1054_v26 }
 0x164   : > { %v937_v13 = vmul.f32 %v936_v46, %v934_v15  ;;  %v944_v41 = vmul.f32 %v943_v38, %v934_v15  ;;  %v1060_v42 = vadd.s32 536870912, %v1059_v20 }
 0x166   : > { %v938_v37 = vadd.f32 -0.4999988, %v937_v13  ;;  %v945_v39 = vadd.f32 -0.16666654, %v944_v41  ;;  %v1061_v52 = vshrl.u32 %v1060_v42, 30 }
 0x168   : > { %v939_v17 = vmul.f32 %v938_v37, %v934_v15  ;;  %v946_v57 = vmul.f32 %v945_v39, %v934_v15  ;;  %v1062_v10 = vshll.u32 %v1061_v52, 30  ;;  %v1085_v44 = vsub.s32 4, %v1061_v52 }
 0x16a   : > { %v940_v63 = vadd.f32 1.0, %v939_v17  ;;  %v947_v62 = vadd.f32 1.0, %v946_v57  ;;  %v1063_v25 = vsub.s32 %v1059_v20, %v1062_v10  ;;  %v1086_v31 = vsel %vm963_vm6, %v1085_v44, %v1061_v52 }
 0x16b   : > { %v1088_v35 = vsel %vm962_vm7, 0, %v1086_v31 }
 0x16c   : > { %v948_v1 = vmul.f32 %v947_v62, %v932_v12  ;;  %v957_v14 = vxor.u32 2147483648, %v940_v63  ;;  %vm1064_vm2 = vcmp.lt.s32.totalorder %v1063_v25, 0  ;;  %v1065_v56 = vsub.s32 0, %v1063_v25 }
 0x16d   : > { %v1105_v49 = vadd.s32 3, %v1088_v35 }
 0x16e   : > { %v954_v53 = vxor.u32 2147483648, %v948_v1  ;;  %v958_v48 = vsel %vm956_vm1, %v957_v14, %v948_v1  ;;  %v1066_v59 = vsel %vm1064_vm2, %v1065_v56, %v1063_v25 }
 0x16f   : > { %v1067_v60 = vclz %v1066_v59  ;;  %v1106_v29 = vand.u32 3, %v1105_v49 }
 0x170   : > { %v955_v47 = vsel %vm953_vm0, %v940_v63, %v954_v53 }
 0x171   : > { %v959_v45 = vsel %vm952_vm3, %v955_v47, %v958_v48  ;;  %v1270_v24 = vadd.s32 4294967294, %v1067_v60  ;;  %vm1108_vm8 = vcmp.eq.s32.totalorder %v1106_v29, 0  ;;  %vm1111_vm9 = vcmp.eq.s32.totalorder %v1106_v29, 2 }
 0x172   : > { %v960_v22 = vsel %vm949_vm4, nan, %v959_v45  ;;  %vm1107_vm10 = vcmp.lt.s32.totalorder %v1106_v29, 2 }
 0x173   : > { %1120 = vst [vmem:[%s1829_s4 + $0x20] sm:$0xff] %v960_v22  ;;  %vm1271_vm5 = vcmp.lt.s32.totalorder %v1270_v24, 0 }
 0x174   : > { %v1070_v36 = vsel %vm1271_vm5, 0, %v1270_v24 }
 0x175   : > { %v1071_v33 = vsub.s32 32, %v1070_v36  ;;  %v1075_v40 = vsub.s32 4294967266, %v1070_v36  ;;  %v1072_v12 = vshll.u32 %v1063_v25, %v1070_v36 }
 0x177   : > { %v1073_v43 = vshrl.u32 %v1055_v50, %v1071_v33  ;;  %v1076_v58 = vadd.s32 127, %v1075_v40 }
 0x179   : > { %v1074_v21 = vor.u32 %v1073_v43, %v1072_v12  ;;  %v1077_v15 = vshll.u32 %v1076_v58, 23 }
 0x17b   : > { %v1078_v23 = vor.u32 4788187, %v1077_v15  ;;  %v1081_v34 = vcvt.s32.f32 %v1074_v21 }
 0x17d   : > { %v1079_v55 = vand.u32 2147483647, %v1078_v23 }
 0x17f   : > { %v1082_v27 = vmul.f32 %v1081_v34, %v1079_v55 }
 0x181   : > { %v1083_v18 = vxor.u32 2147483648, %v1082_v27 }
 0x183   : > { %v1084_v51 = vsel %vm963_vm6, %v1083_v18, %v1082_v27 }
 0x184   : > { %v1087_v0 = vsel %vm962_vm7, %v1527_v28, %v1084_v51 }
 0x185   : > { %v1089_v30 = vmul.f32 %v1087_v0, %v1087_v0 }
 0x187   : > { %v1090_v61 = vmul.f32 -0.001358992, %v1089_v30  ;;  %v1097_v54 = vmul.f32 -0.00019511016, %v1089_v30 }
 0x189   : > { %v1091_v46 = vadd.f32 0.041655596, %v1090_v61  ;;  %v1098_v38 = vadd.f32 0.008332121, %v1097_v54 }
 0x18b   : > { %v1092_v26 = vmul.f32 %v1091_v46, %v1089_v30  ;;  %v1099_v16 = vmul.f32 %v1098_v38, %v1089_v30 }
 0x18d   : > { %v1093_v13 = vadd.f32 -0.4999988, %v1092_v26  ;;  %v1100_v41 = vadd.f32 -0.16666654, %v1099_v16 }
 0x18f   : > { %v1094_v20 = vmul.f32 %v1093_v13, %v1089_v30  ;;  %v1101_v37 = vmul.f32 %v1100_v41, %v1089_v30 }
 0x191   : > { %v1095_v32 = vadd.f32 1.0, %v1094_v20  ;;  %v1102_v39 = vadd.f32 1.0, %v1101_v37 }
 0x193   : > { %v1103_v42 = vmul.f32 %v1102_v39, %v1087_v0  ;;  %v1112_v17 = vxor.u32 2147483648, %v1095_v32 }
 0x195   : > { %v1109_v57 = vxor.u32 2147483648, %v1103_v42  ;;  %v1113_v63 = vsel %vm1111_vm9, %v1112_v17, %v1103_v42 }
 0x196   : > { %1125 = sbr.rel (%p1272_p11) target bundleno = 540 (0x21c), region = 32 }
 0x197   : > { %v1110_v52 = vsel %vm1108_vm8, %v1095_v32, %v1109_v57 }
 0x198   : > { %v1114_v62 = vsel %vm1107_vm10, %v1110_v52, %v1113_v63 }
 0x199   : > { %v1115_v19 = vsel %vm1104_vm11, nan, %v1114_v62 }
 0x19a   : > { %1121 = vst [vmem:[%s1829_s4 + $0x28] sm:$0xff] %v1115_v19 }
 0x19b   : > { %v1126_v10 = vld [vmem:[%s1468_s25] sm:$0x1]  ;;  %v1398_v1 = vmov 0   ;;  %vm1155_vm12 = vcmask 1040384   ;;  %vm1157_vm13 = vcmask 1041408   ;;  %v2221_v45 = vperm.slane %v1479_v3, 2 }
 0x19c   : > { %1326 = vset.pattern.permute.xlu0 %v1398_v1  ;;  %v2222_v59 = vperm.slane %v1479_v3, 3  ;;  %vm1159_vm14 = vcmask 1043459   ;;  %v1166_v22 = vlaneseq  ;;  %vm1161_vm15 = vcmask 1044483  }
 0x19d   : > { %1129 = vperm.xlu0 %1326, %v1126_v10   ;;  %vm1163_vm0 = vcmask 1042432  }
 0x19e   : > { %vm1168_vm1 = vcmp.lt.s32.totalorder %v1166_v22, 768 }
 0x20f   : > { %v1130_v14 = vpop.permute.xlu0 %1129 }
 0x210   : > { %v1132_v25 = vmul.f32 %v1130_v14, %v149_v4  ;;  %v1133_v53 = vmul.f32 %v1130_v14, %v150_v5  ;;  %v1134_v28 = vmul.f32 %v1130_v14, %v151_v6  ;;  %v1135_v56 = vmul.f32 %v1130_v14, %v152_v7 }
 0x211   : > { %v1136_v47 = vmul.f32 %v1130_v14, %v153_v8  ;;  %v1137_v48 = vmul.f32 %v1130_v14, %v154_v9  ;;  %v2223_v7 = vperm.slane %v1479_v3, 4  ;;  %v2224_v8 = vperm.slane %v1479_v3, 5 }
 0x212   : > { %v1139_v4 = vadd.f32 %v1133_v53, %v169_v11  ;;  %v1140_v5 = vadd.f32 %v1134_v28, %v2221_v45  ;;  %v1141_v6 = vadd.f32 %v1135_v56, %v2222_v59  ;;  %v2225_v9 = vperm.slane %v1479_v3, 0 }
 0x213   : > { %v1142_v60 = vadd.f32 %v1136_v47, %v2223_v7  ;;  %v1143_v2 = vadd.f32 %v1137_v48, %v2224_v8 }
 0x214   : > { %v1138_v24 = vadd.f32 %v1132_v25, %v2225_v9  ;;  %v1150_v11 = vrot.slane %v1139_v4, 7  ;;  %v1151_v36 = vrot.slane %v1140_v5, 6  ;;  %v1152_v50 = vrot.slane %v1141_v6, 5 }
 0x215   : > { %v1153_v33 = vrot.slane %v1142_v60, 4  ;;  %v1154_v40 = vrot.slane %v1143_v2, 3 }
 0x216   : > { %v1156_v12 = vsel %vm1155_vm12, %v1138_v24, %v1150_v11 }
 0x217   : > { %v1158_v43 = vsel %vm1157_vm13, %v1156_v12, %v1151_v36  ;;  %v1160_v58 = vsel %vm1159_vm14, %v1152_v50, %v1153_v33 }
 0x218   : > { %v1162_v21 = vsel %vm1161_vm15, %v1160_v58, %v1154_v40 }
 0x219   : > { %v1164_v15 = vsel %vm1163_vm0, %v1158_v43, %v1162_v21 }
 0x21a   : > { %1170 = vst.msk [vmem:[%s1829_s4] ss:$8 sm:$0xf] %vm1168_vm1, %v1164_v15 }
 0x21b   : > { %1171 = vst.msk [vmem:[%s1829_s4] ss:$8 sm:$0x30] %vm1168_vm1, %v1164_v15 }
 0x21c PF: > { %s1277_s5 = smul.u32 48, %s1435_s13  ;;  %s1186_s6 = sshll.u32 %s1829_s4, 4  ;;  %s1187_s6 = int_to_ptr.vmem [resolvable:$true] %s1186_s6 }
 0x21d   : > { %s1173_s17 = scalar_lea.sflag [#allocation3], %s132_s30  ;;  %s1347_s13 = scalar_lea.hbm %s2205_s2, 96 }
 0x21e   : > { %s1184_s14 = scalar_lea.hbm %s2205_s2, %s1277_s5 }
 0x21f   : > { %s1188_s16 = sshll.u32 %s1184_s14, 4  ;;  %s1189_s16 = int_to_ptr.hbm [resolvable:$true] %s1188_s16 }
 0x220   : > { %s1341_s21 = sshra.s32 %s1189_s16, 4  ;;  %s1342_s21 = int_to_ptr.hbm [resolvable:$true] %s1341_s21 }
 0x221   : > { %s1343_s22 = scalar_lea.hbm %s1342_s21, 48  ;;  %p1348_p1 = scmp.lt.s32.totalorder %s1342_s21, %s2205_s2 }
 0x222   : > { %p1344_p12 = scmp.ne.s32.totalorder %s1342_s21, %s1343_s22  ;;  %p1349_p2 = scmp.lt.s32.totalorder %s1347_s13, %s1343_s22 }
 0x224   : > { %p1345_p13 = pnand %p1344_p12, %p1452_p5  ;;  %p1350_p3 = por %p1349_p2, %p1348_p1 }
 0x226   : > { %p1346_p0 = pneg %p1345_p13 }
 0x228   : > { %p1351_p4 = pnand %p1350_p3, %p1346_p0 }
 0x22a   : > { %1354 = shalt.err (!%p1351_p4)
}
 0x22b   : > { %1278 = dma.vmem_to_hbm [thread:$0]  (%p1452_p5), %s1187_s6, 768, %s1189_s16, %s1173_s17  }
 0x22c PF: > { %p1284_p7 = scmp.ge.s32.totalorder %s1389_s12, 2  ;;  %s1200_s27 = sand.u32 1, %s1377_s9  }
 0x22d   : > { %s1201_s28 = scalar_lea.sflag [#allocation3], %s1200_s27 }
 0x22e   : > { %p1281_p8 = pnand %p1284_p7, %p1456_p6 }
 0x230   : > { %p1282_p9 = pneg %p1281_p8 }
 0x232   : > { %1372 = dma.done.wait (%p1282_p9), %s1201_s28, 768  }
 0x233   : > { %1374 = vsyncadd (%p1282_p9), %s1201_s28, 4294966528  ;;  %p12_p10 = scmp.ge.s32.totalorder %s1439_s15, 4   ;;  %s2226_s9 = smov %s1381_s10 }
 0x234   : > { %s2227_s10 = smov %s1385_s11  ;;  %s2228_s11 = smov %s1450_s18 }
 0x235   : > { %s2229_s12 = smov %s1439_s15  ;;  %14 = sbr.rel (!%p12_p10) target bundleno = 3 (0x3), region = 68 }
 0x23a   :  { %1207 = vsyncpa [#allocation3], 1 }
 0x23b   :  { %1209 = vsyncpa [#allocation3 + $0x1], 1 }

</bundles_post_ra>
